<compile_context>
chip_gen: v7x
topology: tpu7x:2x2x1
jax: 0.10.0
libtpu: 0.0.40
codegen_flags: <defaults>
</compile_context>

<pallas_src>
import functools

import jax
import jax.numpy as jnp
from jax.experimental import pallas as pl
from jax.experimental.pallas import tpu as pltpu

BN_EPS = 1e-5
NEG_SLOPE = 0.2


def _round_up(x, m):
    return (x + m - 1) // m * m


def _default_vmem_limit_bytes():
    """Per-generation VMEM budget: ~100 MiB on v5e/v6e (128 MiB/core), ~48 MiB on v7x."""
    try:
        cap = int(pltpu.get_tpu_info().vmem_capacity_bytes)
        return min(int(cap * 0.8), 112 * 1024 * 1024)
    except Exception:
        pass
    try:
        dev = jax.devices()[0]
        kind = getattr(dev, "device_kind", "").lower()
        if dev.platform == "tpu" and any(t in kind for t in ("v5 lite", "v5e", "v5litepod", "v6")):
            return 100 * 1024 * 1024
    except Exception:
        pass
    return 48 * 1024 * 1024  # conservative (safe for v7x's 64 MiB/TC)


# --------------------------- Pass 1: conv GEMM + BN partial stats ------------

def _conv_gemm_kernel(patches_ref, w_ref, b_ref, y_ref, stats_ref, acc_ref,
                      *, m_valid, tm):
    # Grid ids hoisted to the top of the body (never inside a pl.when branch).
    i = pl.program_id(0)
    k = pl.program_id(1)
    nk = pl.num_programs(1)

    @pl.when(k == 0)
    def _init():
        acc_ref[...] = jnp.zeros_like(acc_ref)

    # Weight is fully VMEM-resident (constant index_map); pick its k-th
    # (tk, Cpad) slab by block-granular leading-axis indexing.
    acc_ref[...] += jnp.dot(patches_ref[...], w_ref[k],
                            preferred_element_type=jnp.float32)

    @pl.when(k == nk - 1)
    def _finalize():
        y = acc_ref[...] + b_ref[...]                      # (tm, Cpad) f32
        y_ref[...] = y.astype(y_ref.dtype)                 # bf16 intermediate
        cpad = y.shape[1]
        # Mask pure-padding rows so batch statistics stay exact; emit per-tile
        # shifted (Welford-combinable) partials: masked sum and centered M2.
        rows = i * tm + jax.lax.broadcasted_iota(jnp.int32, y.shape, 0)
        mask = (rows < m_valid).astype(jnp.float32)
        cnt = jnp.minimum(tm, m_valid - i * tm).astype(jnp.float32)   # >= 1
        s = jnp.sum(y * mask, axis=0, keepdims=True)                   # (1, Cpad)
        mu = s / cnt
        d = (y - mu) * mask
        m2 = jnp.sum(d * d, axis=0, keepdims=True)                     # (1, Cpad)
        # Full 8-sublane store (rows 2..7 unused) -> unmasked vst.
        stats_ref[...] = jnp.concatenate(
            [s, m2, jnp.zeros((6, cpad), jnp.float32)], axis=0)[None]


def _conv_gemm(patches_p, w_p, b_row, m_valid, tm, tk, vmem_limit):
    M_pad, K_pad = patches_p.shape
    nk_w, tk_w, Cpad = w_p.shape
    nm, nk = M_pad // tm, K_pad // tk
    assert (nk_w, tk_w) == (nk, tk)

    kernel = functools.partial(_conv_gemm_kernel, m_valid=m_valid, tm=tm)
    flops = 2 * M_pad * K_pad * Cpad
    bytes_accessed = (patches_p.size * 2 + w_p.size * 2          # bf16 reads
                      + M_pad * Cpad * 2                         # bf16 y write
                      + nm * 8 * Cpad * 4 + Cpad * 4)

    return pl.pallas_call(
        kernel,
        out_shape=(
            jax.ShapeDtypeStruct((M_pad, Cpad), jnp.bfloat16),   # conv output y
            jax.ShapeDtypeStruct((nm, 8, Cpad), jnp.float32),    # per-tile stats
        ),
        grid=(nm, nk),
        in_specs=[
            pl.BlockSpec((tm, tk), lambda i, k: (i, k)),            # patches tile
            pl.BlockSpec((nk, tk, Cpad), lambda i, k: (0, 0, 0)),   # resident W
            pl.BlockSpec((1, Cpad), lambda i, k: (0, 0)),           # bias row
        ],
        out_specs=(
            pl.BlockSpec((tm, Cpad), lambda i, k: (i, 0)),
            pl.BlockSpec((1, 8, Cpad), lambda i, k: (i, 0, 0)),
        ),
        scratch_shapes=[pltpu.VMEM((tm, Cpad), jnp.float32)],
        compiler_params=pltpu.CompilerParams(
            dimension_semantics=("parallel", "arbitrary"),
            vmem_limit_bytes=vmem_limit),
        cost_estimate=pl.CostEstimate(
            flops=flops, transcendentals=0, bytes_accessed=bytes_accessed),
    )(patches_p, w_p, b_row)


# --------------------------- Pass 2: BN affine + LeakyReLU -------------------

def _bn_act_kernel(y_ref, scale_ref, shift_ref, o_ref, *, apply_act):
    z = y_ref[...].astype(jnp.float32) * scale_ref[...] + shift_ref[...]
    if apply_act:
        z = jnp.where(z > 0, z, NEG_SLOPE * z)
    o_ref[...] = z


def _bn_act(y, scale_row, shift_row, tm2, apply_act, vmem_limit):
    M_pad, Cpad = y.shape
    nm = M_pad // tm2
    kernel = functools.partial(_bn_act_kernel, apply_act=apply_act)
    return pl.pallas_call(
        kernel,
        out_shape=jax.ShapeDtypeStruct((M_pad, Cpad), jnp.float32),
        grid=(nm,),
        in_specs=[
            pl.BlockSpec((tm2, Cpad), lambda i: (i, 0)),
            pl.BlockSpec((1, Cpad), lambda i: (0, 0)),
            pl.BlockSpec((1, Cpad), lambda i: (0, 0)),
        ],
        out_specs=pl.BlockSpec((tm2, Cpad), lambda i: (i, 0)),
        compiler_params=pltpu.CompilerParams(
            dimension_semantics=("parallel",),
            vmem_limit_bytes=vmem_limit),
    )(y, scale_row, shift_row)


# --------------------------- Glue --------------------------------------------

def _im2col(x, K, stride, pad):
    """x: (N, C, H, W) -> patches (N*Ho*Wo, C*K*K), feature order (c, kh, kw)."""
    N, C, H, W = x.shape
    xp = jnp.pad(x, ((0, 0), (0, 0), (pad, pad), (pad, pad)))
    Ho = (H + 2 * pad - K) // stride + 1
    Wo = (W + 2 * pad - K) // stride + 1
    cols = []
    for kh in range(K):
        for kw in range(K):
            sl = xp[:, :,
                    kh:kh + stride * (Ho - 1) + 1:stride,
                    kw:kw + stride * (Wo - 1) + 1:stride]   # (N, C, Ho, Wo)
            cols.append(sl)
    p = jnp.stack(cols, axis=2)                # (N, C, K*K, Ho, Wo)
    p = p.transpose(0, 3, 4, 1, 2)             # (N, Ho, Wo, C, K*K)
    return p.reshape(N * Ho * Wo, C * K * K), Ho, Wo


@functools.partial(jax.jit, static_argnames=(
    "kernel_size", "stride", "act", "tm", "tk", "out_format"))
def down_block_forward(x, conv_w, conv_b, bn_gamma, bn_beta,
                       kernel_size=5, stride=2, act='relu',
                       tm=512, tk=512, out_format='NCHW'):
    """x: (N, C_in, H, W) f32. Returns f32 in NCHW (default) or NHWC."""
    assert act.lower() in ('relu', 'none')
    assert out_format in ('NCHW', 'NHWC')
    pad = 0 if kernel_size == 1 else 1
    N, C_in, H, W = x.shape
    C_out = conv_w.shape[0]
    K = kernel_size
    vmem_limit = _default_vmem_limit_bytes()

    # bf16 im2col (cast/pad fuse under jit -> single bf16 patches in HBM).
    patches, Ho, Wo = _im2col(x.astype(jnp.bfloat16), K, stride, pad)
    M, CKK = patches.shape

    # Lane/sublane-friendly padding (256-aligned output channels for the
    # 256-wide MXU on v6e/v7x once C_out is large enough).
    lane_unit = 256 if C_out >= 256 else 128
    Cpad = _round_up(max(C_out, 128), lane_unit)
    Kpad = _round_up(max(CKK, 128), 128)
    tk = min(tk, Kpad)
    Kpad = _round_up(Kpad, tk)
    nk = Kpad // tk
    tm = _round_up(min(tm, _round_up(M, 8)), 8)
    M_pad = _round_up(M, tm)
    nm = M_pad // tm

    patches_p = jnp.zeros((M_pad, Kpad), jnp.bfloat16).at[:M, :CKK].set(patches)
    w_mat = conv_w.reshape(C_out, C_in * K * K).T.astype(jnp.bfloat16)  # (CKK, Cout)
    w_p = (jnp.zeros((Kpad, Cpad), jnp.bfloat16)
           .at[:CKK, :C_out].set(w_mat)
           .reshape(nk, tk, Cpad))
    b_row = jnp.zeros((1, Cpad), jnp.float32).at[0, :C_out].set(conv_b)

    # Pass 1: conv GEMM (f32 accumulation) + per-tile BN partials.
    y, stats = _conv_gemm(patches_p, w_p, b_row, M, tm, tk, vmem_limit)

    # Parallel-Welford combine of per-tile partials -> biased batch mean/var.
    n_i = jnp.minimum(tm, M - jnp.arange(nm) * tm).astype(jnp.float32)   # (nm,)
    sums = stats[:, 0, :]                                                # (nm, Cpad)
    m2s = stats[:, 1, :]
    mean = jnp.sum(sums, axis=0) / M
    mu_i = sums / n_i[:, None]
    var = (jnp.sum(m2s, axis=0)
           + jnp.sum(n_i[:, None] * jnp.square(mu_i - mean[None, :]), axis=0)) / M
    var = jnp.maximum(var, 0.0)

    # Hoist BN affine into two broadcast rows for pass 2.
    gamma_p = jnp.zeros((Cpad,), jnp.float32).at[:C_out].set(bn_gamma)
    beta_p = jnp.zeros((Cpad,), jnp.float32).at[:C_out].set(bn_beta)
    scale = gamma_p * jax.lax.rsqrt(var + BN_EPS)
    shift = beta_p - mean * scale
    scale_row = scale.reshape(1, Cpad)
    shift_row = shift.reshape(1, Cpad)

    # Pass-2 tile: decoupled from pass-1 tm; grow towards 2048 rows while it
    # divides M_pad and fits comfortably in the VMEM budget.
    tm2 = tm
    while (tm2 * 2 <= 2048 and M_pad % (tm2 * 2) == 0
           and (tm2 * 2) * Cpad * 12 <= vmem_limit // 2):
        tm2 *= 2

    out_p = _bn_act(y, scale_row, shift_row, tm2,
                    apply_act=(act.lower() == 'relu'), vmem_limit=vmem_limit)

    out = out_p[:M, :C_out].reshape(N, Ho, Wo, C_out)
    if out_format == 'NHWC':
        return out            # skips the extra HBM round trip of the transpose
    return out.transpose(0, 3, 1, 2)


# --------------------------- Reference & test ---------------------------------

def _reference(x, conv_w, conv_b, bn_gamma, bn_beta, stride=2, pad=1):
    # Match the kernel's bf16-operand / f32-accumulation conv numerics.
    y = jax.lax.conv_general_dilated(
        x.astype(jnp.bfloat16), conv_w.astype(jnp.bfloat16),
        window_strides=(stride, stride),
        padding=((pad, pad), (pad, pad)),
        dimension_numbers=('NCHW', 'OIHW', 'NCHW'),
        preferred_element_type=jnp.float32)
    y = y + conv_b.reshape(1, -1, 1, 1)
    mean = jnp.mean(y, axis=(0, 2, 3), keepdims=True)
    var = jnp.mean(jnp.square(y - mean), axis=(0, 2, 3), keepdims=True)
    y = (y - mean) * jax.lax.rsqrt(var + BN_EPS)
    y = bn_gamma.reshape(1, -1, 1, 1) * y + bn_beta.reshape(1, -1, 1, 1)
    return jnp.where(y > 0, y, NEG_SLOPE * y)


if __name__ == "__main__":
    key = jax.random.PRNGKey(0)
    k_x, k_w, k_b, k_g, k_be = jax.random.split(key, 5)

    N, C_in, H, W = 2, 4, 16, 16
    C_out, K = 8, 5

    x = jax.random.normal(k_x, (N, C_in, H, W), jnp.float32)
    conv_w = jax.random.normal(k_w, (C_out, C_in, K, K), jnp.float32) * 0.1
    conv_b = jax.random.normal(k_b, (C_out,), jnp.float32) * 0.1
    bn_gamma = 1.0 + 0.1 * jax.random.normal(k_g, (C_out,), jnp.float32)
    bn_beta = 0.1 * jax.random.normal(k_be, (C_out,), jnp.float32)

    out = down_block_forward(x, conv_w, conv_b, bn_gamma, bn_beta)
    out = jax.block_until_ready(out)

    ref = _reference(x, conv_w, conv_b, bn_gamma, bn_beta)
    assert out.shape == (N, C_out, 7, 7), out.shape
    err = float(jnp.max(jnp.abs(out - ref)))
    assert jnp.allclose(out, ref, atol=1e-2, rtol=1e-2), err

    print("KERNEL_OK")
</pallas_src>

<mosaic_0001>
module attributes {stable_mosaic.version = 11 : i64} {
  func.func @_conv_gemm_kernel(%arg0: i32, %arg1: i32, %arg2: memref<104x128xbf16, #tpu.memory_space<vmem>>, %arg3: memref<1x128x128xbf16, #tpu.memory_space<vmem>>, %arg4: memref<1x128xf32, #tpu.memory_space<vmem>>, %arg5: memref<104x128xbf16, #tpu.memory_space<vmem>>, %arg6: memref<1x8x128xf32, #tpu.memory_space<vmem>>, %arg7: memref<104x128xf32, #tpu.memory_space<vmem>>) attributes {dimension_semantics = [#tpu.dimension_semantics<parallel>, #tpu.dimension_semantics<arbitrary>], iteration_bounds = array<i64: 1, 1>, scalar_prefetch = 0 : i64, scratch_operands = 1 : i64, tpu.core_type = #tpu.core_type<tc>, window_params = [{transform_indices = @transform_0, window_bounds = array<i64: 104, 128>}, {pipeline_mode = #tpu.pipeline_mode<synchronous>, transform_indices = @transform_1, window_bounds = array<i64: 1, 128, 128>}, {pipeline_mode = #tpu.pipeline_mode<synchronous>, transform_indices = @transform_2, window_bounds = array<i64: 1, 128>}, {transform_indices = @transform_3, window_bounds = array<i64: 104, 128>}, {transform_indices = @transform_4, window_bounds = array<i64: 1, 8, 128>}]} {
    %c0_i32 = arith.constant 0 : i32
    %0 = arith.cmpi eq, %arg1, %c0_i32 : i32
    %1 = arith.extui %0 : i1 to i32
    %c0_i32_0 = arith.constant 0 : i32
    %2 = arith.cmpi ne, %1, %c0_i32_0 : i32
    scf.if %2 {
      %cst_10 = arith.constant 0.000000e+00 : f32
      %14 = vector.broadcast %cst_10 : f32 to vector<104x128xf32>
      %c0_11 = arith.constant 0 : index
      %c0_12 = arith.constant 0 : index
      %15 = vector.load %arg7[%c0_11, %c0_12] : memref<104x128xf32, #tpu.memory_space<vmem>>, vector<104x128xf32>
      tpu.vector_store %arg7[%c0_11, %c0_12], %14 {strides = array<i32>} : memref<104x128xf32, #tpu.memory_space<vmem>>, vector<104x128xf32>,
    } else {
    }
    %c0 = arith.constant 0 : index
    %c0_1 = arith.constant 0 : index
    %3 = vector.load %arg7[%c0, %c0_1] : memref<104x128xf32, #tpu.memory_space<vmem>>, vector<104x128xf32>
    %c0_2 = arith.constant 0 : index
    %c0_3 = arith.constant 0 : index
    %4 = vector.load %arg2[%c0_2, %c0_3] : memref<104x128xbf16, #tpu.memory_space<vmem>>, vector<104x128xbf16>
    %5 = arith.index_cast %arg1 : i32 to index
    %c0_4 = arith.constant 0 : index
    %c0_5 = arith.constant 0 : index
    %6 = vector.load %arg3[%5, %c0_4, %c0_5] : memref<1x128x128xbf16, #tpu.memory_space<vmem>>, vector<1x128x128xbf16>
    %7 = vector.shape_cast %6 : vector<1x128x128xbf16> to vector<128x128xbf16>
    %cst = arith.constant dense<0.000000e+00> : vector<104x128xf32>
    %8 = tpu.matmul %4, %7, %cst {dimension_numbers = #tpu.dot_dimension_numbers<[1], [0], [0], [1], [0, 0, 1, 1], [], []>} : vector<104x128xbf16>, vector<128x128xbf16>, vector<104x128xf32> -> vector<104x128xf32>
    %9 = arith.addf %3, %8 : vector<104x128xf32>
    %c0_6 = arith.constant 0 : index
    %c0_7 = arith.constant 0 : index
    %10 = vector.load %arg7[%c0_6, %c0_7] : memref<104x128xf32, #tpu.memory_space<vmem>>, vector<104x128xf32>
    tpu.vector_store %arg7[%c0_6, %c0_7], %9 {strides = array<i32>} : memref<104x128xf32, #tpu.memory_space<vmem>>, vector<104x128xf32>,
    %c0_i32_8 = arith.constant 0 : i32
    %11 = arith.cmpi eq, %arg1, %c0_i32_8 : i32
    %12 = arith.extui %11 : i1 to i32
    %c0_i32_9 = arith.constant 0 : i32
    %13 = arith.cmpi ne, %12, %c0_i32_9 : i32
    scf.if %13 {
      %c0_10 = arith.constant 0 : index
      %c0_11 = arith.constant 0 : index
      %14 = vector.load %arg7[%c0_10, %c0_11] : memref<104x128xf32, #tpu.memory_space<vmem>>, vector<104x128xf32>
      %c0_12 = arith.constant 0 : index
      %c0_13 = arith.constant 0 : index
      %15 = vector.load %arg4[%c0_12, %c0_13] : memref<1x128xf32, #tpu.memory_space<vmem>>, vector<1x128xf32>
      %16 = vector.broadcast %15 : vector<1x128xf32> to vector<104x128xf32>
      %17 = arith.addf %14, %16 : vector<104x128xf32>
      %18 = arith.truncf %17 : vector<104x128xf32> to vector<104x128xbf16>
      %c0_14 = arith.constant 0 : index
      %c0_15 = arith.constant 0 : index
      %19 = vector.load %arg5[%c0_14, %c0_15] : memref<104x128xbf16, #tpu.memory_space<vmem>>, vector<104x128xbf16>
      tpu.vector_store %arg5[%c0_14, %c0_15], %18 {strides = array<i32>} : memref<104x128xbf16, #tpu.memory_space<vmem>>, vector<104x128xbf16>,
      %c104_i32 = arith.constant 104 : i32
      %20 = arith.muli %arg0, %c104_i32 : i32
      %21 = tpu.iota {dimensions = array<i32: 0>} : vector<104x128xi32>
      %22 = vector.broadcast %20 : i32 to vector<104x128xi32>
      %23 = arith.addi %22, %21 : vector<104x128xi32>
      %c98_i32 = arith.constant 98 : i32
      %24 = vector.broadcast %c98_i32 : i32 to vector<104x128xi32>
      %25 = arith.cmpi slt, %23, %24 : vector<104x128xi32>
      %26 = arith.extui %25 : vector<104x128xi1> to vector<104x128xi32>
      %27 = arith.sitofp %26 : vector<104x128xi32> to vector<104x128xf32>
      %c104_i32_16 = arith.constant 104 : i32
      %28 = arith.muli %arg0, %c104_i32_16 : i32
      %c98_i32_17 = arith.constant 98 : i32
      %29 = arith.subi %c98_i32_17, %28 : i32
      %c104_i32_18 = arith.constant 104 : i32
      %30 = arith.minsi %c104_i32_18, %29 : i32
      %31 = arith.sitofp %30 : i32 to f32
      %32 = arith.mulf %17, %27 : vector<104x128xf32>
      %cst_19 = arith.constant dense<0.000000e+00> : vector<128xf32>
      %33 = vector.multi_reduction <add>, %32, %cst_19 [0] : vector<104x128xf32> to vector<128xf32>
      %34 = vector.shape_cast %33 : vector<128xf32> to vector<1x128xf32>
      %35 = vector.broadcast %31 : f32 to vector<1x128xf32>
      %36 = arith.divf %34, %35 : vector<1x128xf32>
      %37 = vector.broadcast %36 : vector<1x128xf32> to vector<104x128xf32>
      %38 = arith.subf %17, %37 : vector<104x128xf32>
      %39 = arith.mulf %38, %27 : vector<104x128xf32>
      %40 = arith.mulf %39, %39 : vector<104x128xf32>
      %cst_20 = arith.constant dense<0.000000e+00> : vector<128xf32>
      %41 = vector.multi_reduction <add>, %40, %cst_20 [0] : vector<104x128xf32> to vector<128xf32>
      %42 = vector.shape_cast %41 : vector<128xf32> to vector<1x128xf32>
      %cst_21 = arith.constant 0.000000e+00 : f32
      %43 = vector.broadcast %cst_21 : f32 to vector<6x128xf32>
      %44 = tpu.concatenate %34, %42, %43 in 0 : vector<1x128xf32>, vector<1x128xf32>, vector<6x128xf32> -> vector<8x128xf32>
      %45 = vector.shape_cast %44 : vector<8x128xf32> to vector<1x8x128xf32>
      %c0_22 = arith.constant 0 : index
      %c0_23 = arith.constant 0 : index
      %c0_24 = arith.constant 0 : index
      %46 = vector.load %arg6[%c0_22, %c0_23, %c0_24] : memref<1x8x128xf32, #tpu.memory_space<vmem>>, vector<1x8x128xf32>
      tpu.vector_store %arg6[%c0_22, %c0_23, %c0_24], %45 {strides = array<i32>} : memref<1x8x128xf32, #tpu.memory_space<vmem>>, vector<1x8x128xf32>,
    } else {
    }
    return
  }
  func.func @transform_0(%arg0: i32, %arg1: i32) -> (i32, i32) {
    %c0_i32 = arith.constant 0 : i32
    return %arg0, %arg1 : i32, i32
  }
  func.func @transform_1(%arg0: i32, %arg1: i32) -> (i32, i32, i32) {
    %c0_i32 = arith.constant 0 : i32
    %c0_i32_0 = arith.constant 0 : i32
    %c0_i32_1 = arith.constant 0 : i32
    %c0_i32_2 = arith.constant 0 : i32
    return %c0_i32, %c0_i32_0, %c0_i32_1 : i32, i32, i32
  }
  func.func @transform_2(%arg0: i32, %arg1: i32) -> (i32, i32) {
    %c0_i32 = arith.constant 0 : i32
    %c0_i32_0 = arith.constant 0 : i32
    %c0_i32_1 = arith.constant 0 : i32
    return %c0_i32, %c0_i32_0 : i32, i32
  }
  func.func @transform_3(%arg0: i32, %arg1: i32) -> (i32, i32) {
    %c0_i32 = arith.constant 0 : i32
    %c0_i32_0 = arith.constant 0 : i32
    return %arg0, %c0_i32 : i32, i32
  }
  func.func @transform_4(%arg0: i32, %arg1: i32) -> (i32, i32, i32) {
    %c0_i32 = arith.constant 0 : i32
    %c0_i32_0 = arith.constant 0 : i32
    %c0_i32_1 = arith.constant 0 : i32
    return %arg0, %c0_i32, %c0_i32_0 : i32, i32, i32
  }
}

module attributes {stable_mosaic.version = 11 : i64} {
  func.func @_bn_act_kernel(%arg0: i32, %arg1: memref<104x128xbf16, #tpu.memory_space<vmem>>, %arg2: memref<1x128xf32, #tpu.memory_space<vmem>>, %arg3: memref<1x128xf32, #tpu.memory_space<vmem>>, %arg4: memref<104x128xf32, #tpu.memory_space<vmem>>) attributes {dimension_semantics = [#tpu.dimension_semantics<parallel>], iteration_bounds = array<i64: 1>, scalar_prefetch = 0 : i64, scratch_operands = 0 : i64, tpu.core_type = #tpu.core_type<tc>, window_params = [{transform_indices = @transform_0, window_bounds = array<i64: 104, 128>}, {pipeline_mode = #tpu.pipeline_mode<synchronous>, transform_indices = @transform_1, window_bounds = array<i64: 1, 128>}, {pipeline_mode = #tpu.pipeline_mode<synchronous>, transform_indices = @transform_2, window_bounds = array<i64: 1, 128>}, {transform_indices = @transform_3, window_bounds = array<i64: 104, 128>}]} {
    %c0 = arith.constant 0 : index
    %c0_0 = arith.constant 0 : index
    %0 = vector.load %arg1[%c0, %c0_0] : memref<104x128xbf16, #tpu.memory_space<vmem>>, vector<104x128xbf16>
    %1 = arith.extf %0 : vector<104x128xbf16> to vector<104x128xf32>
    %c0_1 = arith.constant 0 : index
    %c0_2 = arith.constant 0 : index
    %2 = vector.load %arg2[%c0_1, %c0_2] : memref<1x128xf32, #tpu.memory_space<vmem>>, vector<1x128xf32>
    %3 = vector.broadcast %2 : vector<1x128xf32> to vector<104x128xf32>
    %4 = arith.mulf %1, %3 : vector<104x128xf32>
    %c0_3 = arith.constant 0 : index
    %c0_4 = arith.constant 0 : index
    %5 = vector.load %arg3[%c0_3, %c0_4] : memref<1x128xf32, #tpu.memory_space<vmem>>, vector<1x128xf32>
    %6 = vector.broadcast %5 : vector<1x128xf32> to vector<104x128xf32>
    %7 = arith.addf %4, %6 : vector<104x128xf32>
    %cst = arith.constant 0.000000e+00 : f32
    %8 = vector.broadcast %cst : f32 to vector<104x128xf32>
    %9 = arith.cmpf ogt, %7, %8 : vector<104x128xf32>
    %cst_5 = arith.constant 2.000000e-01 : f32
    %10 = vector.broadcast %cst_5 : f32 to vector<104x128xf32>
    %11 = arith.mulf %10, %7 : vector<104x128xf32>
    %12 = arith.select %9, %7, %11 : vector<104x128xi1>, vector<104x128xf32>
    %c0_6 = arith.constant 0 : index
    %c0_7 = arith.constant 0 : index
    %13 = vector.load %arg4[%c0_6, %c0_7] : memref<104x128xf32, #tpu.memory_space<vmem>>, vector<104x128xf32>
    tpu.vector_store %arg4[%c0_6, %c0_7], %12 {strides = array<i32>} : memref<104x128xf32, #tpu.memory_space<vmem>>, vector<104x128xf32>,
    return
  }
  func.func @transform_0(%arg0: i32) -> (i32, i32) {
    %c0_i32 = arith.constant 0 : i32
    %c0_i32_0 = arith.constant 0 : i32
    return %arg0, %c0_i32 : i32, i32
  }
  func.func @transform_1(%arg0: i32) -> (i32, i32) {
    %c0_i32 = arith.constant 0 : i32
    %c0_i32_0 = arith.constant 0 : i32
    %c0_i32_1 = arith.constant 0 : i32
    return %c0_i32, %c0_i32_0 : i32, i32
  }
  func.func @transform_2(%arg0: i32) -> (i32, i32) {
    %c0_i32 = arith.constant 0 : i32
    %c0_i32_0 = arith.constant 0 : i32
    %c0_i32_1 = arith.constant 0 : i32
    return %c0_i32, %c0_i32_0 : i32, i32
  }
  func.func @transform_3(%arg0: i32) -> (i32, i32) {
    %c0_i32 = arith.constant 0 : i32
    %c0_i32_0 = arith.constant 0 : i32
    return %arg0, %c0_i32 : i32, i32
  }
}

</mosaic_0001>

<bundles_post_ra>
// kernel: down_block_forward.3
= control target key start
LH: loop header
LB: loop body
LE: loop exit
PB: predicated region body
PF: predicated region fallthrough
CT: control target
= control target key end

     0   :  { %s283_s0 = inlined_call_operand.vmem [shape: bf16[104,128], index: 0, kind: input, shape index: {}]   ;;  %s284_s1 = inlined_call_operand.vmem [shape: f32[1,128], index: 1, kind: input, shape index: {}]   ;;  %s285_s2 = inlined_call_operand.vmem [shape: f32[1,128], index: 2, kind: input, shape index: {}]   ;;  %s286_s3 = inlined_call_operand.vmem [shape: f32[104,128], index: 3, kind: output, shape index: {}]  }
   0x1   :  { %v139_v0 = vld [vmem:[%s283_s0] sm:$0xff]   ;;  %v162_v4 = vld [vmem:[%s283_s0 + $0x8] sm:$0xff]   ;;  %v163_v5 = vld [vmem:[%s283_s0 + $0x10] sm:$0xff]  }
   0x2   :  { %v193_v1 = vld [vmem:[%s284_s1] ss:$0 sm:$0xff]  ;;  %v140_v2 = vunpack.c.l.bf16 %v139_v0  ;;  %v141_v3 = vunpack.c.h.bf16 %v139_v0  ;;  %v164_v6 = vld [vmem:[%s283_s0 + $0x18] sm:$0xff]   ;;  %v144_v8 = vunpack.c.l.bf16 %v162_v4  ;;  %v145_v9 = vunpack.c.h.bf16 %v162_v4  ;;  %v166_v36 = vld [vmem:[%s283_s0 + $0x28] sm:$0xff]  }
   0x3   :  { %v207_v7 = vld [vmem:[%s285_s2] ss:$0 sm:$0xff]  ;;  %v148_v10 = vunpack.c.l.bf16 %v163_v5  ;;  %v149_v11 = vunpack.c.h.bf16 %v163_v5  ;;  %v152_v14 = vunpack.c.l.bf16 %v164_v6  ;;  %v153_v15 = vunpack.c.h.bf16 %v164_v6  ;;  %v26_v48 = vld [vmem:[%s283_s0 + $0x30] sm:$0xf] }
   0x4   :  { %v47_v12 = vmul.f32 %v140_v2, %v193_v1  ;;  %v48_v13 = vmul.f32 %v141_v3, %v193_v1  ;;  %v49_v16 = vmul.f32 %v144_v8, %v193_v1  ;;  %v50_v17 = vmul.f32 %v145_v9, %v193_v1  ;;  %v165_v28 = vld [vmem:[%s283_s0 + $0x20] sm:$0xff]  }
   0x5   :  { %v51_v18 = vmul.f32 %v148_v10, %v193_v1  ;;  %v52_v19 = vmul.f32 %v149_v11, %v193_v1  ;;  %v53_v22 = vmul.f32 %v152_v14, %v193_v1  ;;  %v54_v23 = vmul.f32 %v153_v15, %v193_v1 }
   0x6   :  { %v67_v20 = vadd.f32 %v207_v7, %v47_v12  ;;  %v68_v21 = vadd.f32 %v207_v7, %v48_v13  ;;  %v69_v24 = vadd.f32 %v207_v7, %v49_v16  ;;  %v70_v25 = vadd.f32 %v207_v7, %v50_v17 }
   0x7   :  { %v71_v26 = vadd.f32 %v207_v7, %v51_v18  ;;  %v72_v27 = vadd.f32 %v207_v7, %v52_v19  ;;  %v73_v41 = vadd.f32 %v207_v7, %v53_v22  ;;  %v74_v42 = vadd.f32 %v207_v7, %v54_v23 }
   0x8   :  { %vm80_vm0 = vcmp.gt.f32.partialorder %v67_v20, 0.0  ;;  %v93_v29 = vmul.f32 0.2, %v67_v20  ;;  %vm81_vm1 = vcmp.gt.f32.partialorder %v68_v21, 0.0  ;;  %v94_v30 = vmul.f32 0.2, %v68_v21 }
   0x9   :  { %vm82_vm2 = vcmp.gt.f32.partialorder %v69_v24, 0.0  ;;  %v95_v31 = vmul.f32 0.2, %v69_v24  ;;  %vm83_vm3 = vcmp.gt.f32.partialorder %v70_v25, 0.0  ;;  %v96_v32 = vmul.f32 0.2, %v70_v25 }
   0xa   :  { %v106_v33 = vsel %vm80_vm0, %v67_v20, %v93_v29  ;;  %v107_v34 = vsel %vm81_vm1, %v68_v21, %v94_v30  ;;  %vm84_vm4 = vcmp.gt.f32.partialorder %v71_v26, 0.0  ;;  %v97_v35 = vmul.f32 0.2, %v71_v26 }
   0xb   :  { %119 = vst [vmem:[%s286_s3] sm:$0xff] %v106_v33  ;;  %120 = vst [vmem:[%s286_s3 + $0x8] sm:$0xff] %v107_v34  ;;  %v108_v37 = vsel %vm82_vm2, %v69_v24, %v95_v31  ;;  %v109_v38 = vsel %vm83_vm3, %v70_v25, %v96_v32  ;;  %vm85_vm5 = vcmp.gt.f32.partialorder %v72_v27, 0.0  ;;  %v98_v39 = vmul.f32 0.2, %v72_v27 }
   0xc   :  { %121 = vst [vmem:[%s286_s3 + $0x10] sm:$0xff] %v108_v37  ;;  %122 = vst [vmem:[%s286_s3 + $0x18] sm:$0xff] %v109_v38  ;;  %v110_v40 = vsel %vm84_vm4, %v71_v26, %v97_v35  ;;  %v156_v43 = vunpack.c.l.bf16 %v165_v28  ;;  %v157_v45 = vunpack.c.h.bf16 %v165_v28  ;;  %v160_v46 = vunpack.c.l.bf16 %v166_v36 }
   0xd   :  { %123 = vst [vmem:[%s286_s3 + $0x20] sm:$0xff] %v110_v40  ;;  %v111_v44 = vsel %vm85_vm5, %v72_v27, %v98_v39  ;;  %v161_v47 = vunpack.c.h.bf16 %v166_v36  ;;  %vm86_vm6 = vcmp.gt.f32.partialorder %v73_v41, 0.0  ;;  %v99_v49 = vmul.f32 0.2, %v73_v41 }
   0xe   :  { %124 = vst [vmem:[%s286_s3 + $0x28] sm:$0xff] %v111_v44  ;;  %vm87_vm7 = vcmp.gt.f32.partialorder %v74_v42, 0.0  ;;  %v100_v50 = vmul.f32 0.2, %v74_v42  ;;  %v55_v51 = vmul.f32 %v156_v43, %v193_v1  ;;  %v56_v52 = vmul.f32 %v157_v45, %v193_v1 }
   0xf   :  { %v57_v53 = vmul.f32 %v160_v46, %v193_v1  ;;  %v58_v54 = vmul.f32 %v161_v47, %v193_v1  ;;  %v112_v55 = vsel %vm86_vm6, %v73_v41, %v99_v49  ;;  %v39_v57 = vunpack.c.l.bf16 %v26_v48 }
  0x10   :  { %v113_v56 = vsel %vm87_vm7, %v74_v42, %v100_v50  ;;  %125 = vst [vmem:[%s286_s3 + $0x30] sm:$0xff] %v112_v55  ;;  %v75_v58 = vadd.f32 %v207_v7, %v55_v51  ;;  %v76_v59 = vadd.f32 %v207_v7, %v56_v52 }
  0x11   :  { %126 = vst [vmem:[%s286_s3 + $0x38] sm:$0xff] %v113_v56  ;;  %v77_v60 = vadd.f32 %v207_v7, %v57_v53  ;;  %v78_v61 = vadd.f32 %v207_v7, %v58_v54  ;;  %v59_v62 = vmul.f32 %v193_v1, %v39_v57 }
  0x12   :  { %vm88_vm8 = vcmp.gt.f32.partialorder %v75_v58, 0.0  ;;  %v101_v63 = vmul.f32 0.2, %v75_v58  ;;  %vm89_vm9 = vcmp.gt.f32.partialorder %v76_v59, 0.0  ;;  %v102_v0 = vmul.f32 0.2, %v76_v59 }
  0x13   :  { %vm90_vm10 = vcmp.gt.f32.partialorder %v77_v60, 0.0  ;;  %v103_v2 = vmul.f32 0.2, %v77_v60  ;;  %vm91_vm11 = vcmp.gt.f32.partialorder %v78_v61, 0.0  ;;  %v104_v3 = vmul.f32 0.2, %v78_v61 }
  0x14   :  { %v114_v4 = vsel %vm88_vm8, %v75_v58, %v101_v63  ;;  %v115_v5 = vsel %vm89_vm9, %v76_v59, %v102_v0  ;;  %v79_v6 = vadd.f32 %v207_v7, %v59_v62 }
  0x15   :  { %127 = vst [vmem:[%s286_s3 + $0x40] sm:$0xff] %v114_v4  ;;  %128 = vst [vmem:[%s286_s3 + $0x48] sm:$0xff] %v115_v5  ;;  %v116_v1 = vsel %vm90_vm10, %v77_v60, %v103_v2  ;;  %v117_v8 = vsel %vm91_vm11, %v78_v61, %v104_v3 }
  0x16   :  { %129 = vst [vmem:[%s286_s3 + $0x50] sm:$0xff] %v116_v1  ;;  %130 = vst [vmem:[%s286_s3 + $0x58] sm:$0xff] %v117_v8  ;;  %vm92_vm12 = vcmp.gt.f32.partialorder %v79_v6, 0.0  ;;  %v105_v7 = vmul.f32 0.2, %v79_v6 }
  0x18   :  { %v118_v9 = vsel %vm92_vm12, %v79_v6, %v105_v7 }
  0x19   :  { %131 = vst [vmem:[%s286_s3 + $0x60] sm:$0xff] %v118_v9 }

// kernel: down_block_forward.2
= control target key start
LH: loop header
LB: loop body
LE: loop exit
PB: predicated region body
PF: predicated region fallthrough
CT: control target
= control target key end

     0   :  { %v729_v0 = vmov 0.0   ;;  %vm730_vm0 = vmmov 0   ;;  %v384_v53 = vlaneseq  ;;  %vm546_vm2 = vcmask 1040384   ;;  %s900_s1 = inlined_call_operand.vmem [shape: bf16[1,128,128], index: 1, kind: input, shape index: {}]   ;;  %s901_s0 = inlined_call_operand.vmem [shape: bf16[104,128], index: 0, kind: input, shape index: {}]   ;;  %s902_s2 = inlined_call_operand.vmem [shape: f32[1,128], index: 2, kind: input, shape index: {}]   ;;  %s903_s3 = inlined_call_operand.vmem [shape: bf16[104,128], index: 3, kind: output, shape index: {0}]   ;;  %s904_s4 = inlined_call_operand.vmem [shape: f32[1,8,128], index: 4, kind: output, shape index: {1}]  }
   0x1   :  { %652 = vmatprep.subr.bf16.mxu0 %v729_v0  ;;  %v714_v1 = vld [vmem:[%s900_s1] sm:$0xff]   ;;  %696 = vmatprep.subr.bf16.mxu1 %v729_v0  ;;  %v715_v2 = vld [vmem:[%s900_s1 + $0x8] sm:$0xff]   ;;  %v716_v3 = vld [vmem:[%s900_s1 + $0x10] sm:$0xff]   ;;  %vm548_vm3 = vcmask 1041408  }
   0x2   :  { %668 = vmatprep.mubr.msk.bf16.mxu0 %vm730_vm0, %v729_v0  ;;  %684 = vmatprep.mubr.msk.bf16.mxu1 %vm730_vm0, %v729_v0  ;;  %v717_v4 = vld [vmem:[%s900_s1 + $0x18] sm:$0xff]   ;;  %v718_v5 = vld [vmem:[%s900_s1 + $0x20] sm:$0xff]   ;;  %v719_v6 = vld [vmem:[%s900_s1 + $0x28] sm:$0xff]  }
   0x3   :  { %653 = vmatpush3.bf16.msra.mxu0 %v714_v1  ;;  %704 = vmatpush3.bf16.msra.mxu1 %v714_v1  ;;  %v720_v7 = vld [vmem:[%s900_s1 + $0x30] sm:$0xff]   ;;  %v721_v8 = vld [vmem:[%s900_s1 + $0x38] sm:$0xff]   ;;  %v722_v9 = vld [vmem:[%s901_s0] sm:$0xff]   ;;  %v385_v1 = vshrl.u32 %v384_v53, 7 }
   0x4   :  { %654 = vmatprep.subr.bf16.mxu0 %v729_v0  ;;  %697 = vmatprep.subr.bf16.mxu1 %v729_v0  ;;  %v724_v10 = vld [vmem:[%s901_s0 + $0x20] sm:$0xff]   ;;  %v723_v11 = vld [vmem:[%s901_s0 + $0x8] sm:$0xff]   ;;  %v725_v13 = vld [vmem:[%s901_s0 + $0x10] sm:$0xff]  }
   0x5   :  { %v726_v12 = vld [vmem:[%s901_s0 + $0x28] sm:$0xff]   ;;  %v728_v14 = vld [vmem:[%s901_s0 + $0x30] ss:$0 sps:$4 sm:$0xff]   ;;  %v727_v15 = vld [vmem:[%s901_s0 + $0x18] sm:$0xff]  }
   0x6   :  { %v574_v17 = vld [vmem:[%s902_s2] ss:$0 sm:$0xff] }
   0x7   :  { %655 = vmatpush3.bf16.msra.mxu0 %v715_v2  ;;  %705 = vmatpush3.bf16.msra.mxu1 %v715_v2 }
   0x8   :  { %656 = vmatprep.subr.bf16.mxu0 %v729_v0  ;;  %698 = vmatprep.subr.bf16.mxu1 %v729_v0 }
   0xb   :  { %657 = vmatpush3.bf16.msra.mxu0 %v716_v3  ;;  %706 = vmatpush3.bf16.msra.mxu1 %v716_v3 }
   0xc   :  { %658 = vmatprep.subr.bf16.mxu0 %v729_v0  ;;  %699 = vmatprep.subr.bf16.mxu1 %v729_v0 }
   0xf   :  { %659 = vmatpush3.bf16.msra.mxu0 %v717_v4  ;;  %707 = vmatpush3.bf16.msra.mxu1 %v717_v4 }
  0x10   :  { %660 = vmatprep.subr.bf16.mxu0 %v729_v0  ;;  %700 = vmatprep.subr.bf16.mxu1 %v729_v0 }
  0x13   :  { %661 = vmatpush3.bf16.msra.mxu0 %v718_v5  ;;  %708 = vmatpush3.bf16.msra.mxu1 %v718_v5  ;;  %v397_v5 = vadd.s32 96, %v385_v1 }
  0x14   :  { %662 = vmatprep.subr.bf16.mxu0 %v729_v0  ;;  %701 = vmatprep.subr.bf16.mxu1 %v729_v0 }
  0x15   :  { %vm424_vm1 = vcmp.lt.s32.totalorder %v397_v5, 98 }
  0x17   :  { %663 = vmatpush3.bf16.msra.mxu0 %v719_v6  ;;  %709 = vmatpush3.bf16.msra.mxu1 %v719_v6 }
  0x18   :  { %664 = vmatprep.subr.bf16.mxu0 %v729_v0  ;;  %702 = vmatprep.subr.bf16.mxu1 %v729_v0 }
  0x1b   :  { %665 = vmatpush3.bf16.msra.mxu0 %v720_v7  ;;  %710 = vmatpush3.bf16.msra.mxu1 %v720_v7 }
  0x1c   :  { %666 = vmatprep.subr.bf16.mxu0 %v729_v0  ;;  %703 = vmatprep.subr.bf16.mxu1 %v729_v0 }
  0x1f   :  { %667 = vmatpush3.bf16.msra.mxu0 %v721_v8  ;;  %711 = vmatpush3.bf16.msra.mxu1 %v721_v8 }
  0x22   :  { %669 = vmatmul.mubr.bf16.vlgmr.msra.gmra.mrb[0].mxu0 %v722_v9  ;;  %685 = vmatmul.mubr.bf16.vlgmr.msra.gmra.mrb[0].mxu1 %v724_v10 }
  0x23   :  { %672 = vmatprep.mubr.msk.bf16.mxu0 %vm730_vm0, %v729_v0  ;;  %688 = vmatprep.mubr.msk.bf16.mxu1 %vm730_vm0, %v729_v0 }
  0x2a   :  { %673 = vmatmul.mubr.bf16.gmra.mrb[4].mxu0 %v723_v11  ;;  %689 = vmatmul.mubr.bf16.gmra.mrb[4].mxu1 %v726_v12 }
  0x2b   :  { %676 = vmatprep.mubr.msk.bf16.mxu0 %vm730_vm0, %v729_v0  ;;  %692 = vmatprep.mubr.msk.bf16.mxu1 %vm730_vm0, %v729_v0 }
  0x32   :  { %677 = vmatmul.mubr.bf16.gmra.mrb[8].mxu0 %v725_v13  ;;  %693 = vmatmul.mubr.bf16.gmra.mrb[8].mxu1 %v728_v14  ;;  %v588_v13 = vsel %vm424_vm1, 1.0, %v729_v0 }
  0x33   :  { %680 = vmatprep.mubr.msk.bf16.mxu0 %vm730_vm0, %v729_v0 }
  0x3a   :  { %681 = vmatmul.mubr.bf16.gmra.mrb[12].mxu0 %v727_v15 }
  0xf5   :  { %v201_v16 = vpop.f32.mrb[0].mxu0  ;;  %v233_v18 = vpop.f32.mrb[0].mxu1 }
  0xf6   :  { %v670_v19 = vpop.f32.mrb[1].mxu0  ;;  %v834_v20 = vadd.f32 %v574_v17, %v233_v18  ;;  %v686_v21 = vpop.f32.mrb[1].mxu1  ;;  %v836_v24 = vadd.f32 %v574_v17, %v201_v16 }
  0xf7   :  { %v204_v22 = vpop.f32.mrb[2].mxu0  ;;  %v236_v23 = vpop.f32.mrb[2].mxu1 }
  0xf8   :  { %v838_v25 = vadd.f32 %v574_v17, %v204_v22  ;;  %v671_v26 = vpop.f32.mrb[3].mxu0  ;;  %v840_v27 = vadd.f32 %v574_v17, %v236_v23  ;;  %v687_v28 = vpop.f32.mrb[3].mxu1 }
  0xfa   :  { %v605_v29 = vpack.c.bf16 %v838_v25, %v836_v24  ;;  %v468_v30 = vadd.f32 %v838_v25, %v836_v24  ;;  %v625_v31 = vpack.c.bf16 %v840_v27, %v834_v20 }
  0xfc   :  { %606 = vst [vmem:[%s903_s3] sm:$0xff] %v605_v29   ;;  %635 = vst [vmem:[%s903_s3 + $0x20] sm:$0xff] %v625_v31  }
  0xfd   :  { %v209_v32 = vpop.f32.mrb[4].mxu0  ;;  %v241_v33 = vpop.f32.mrb[4].mxu1 }
  0xfe   :  { %v854_v34 = vadd.f32 %v574_v17, %v209_v32  ;;  %v674_v35 = vpop.f32.mrb[5].mxu0  ;;  %v856_v36 = vadd.f32 %v574_v17, %v241_v33  ;;  %v690_v37 = vpop.f32.mrb[5].mxu1 }
  0xff   :  { %v212_v38 = vpop.f32.mrb[6].mxu0  ;;  %v244_v39 = vpop.f32.mrb[6].mxu1 }
 0x100   :  { %v469_v40 = vadd.f32 %v468_v30, %v854_v34  ;;  %v307_v41 = vadd.f32 %v574_v17, %v212_v38  ;;  %v675_v42 = vpop.f32.mrb[7].mxu0  ;;  %v859_v43 = vadd.f32 %v574_v17, %v244_v39  ;;  %v691_v44 = vpop.f32.mrb[7].mxu1 }
 0x102   :  { %v610_v45 = vpack.c.bf16 %v307_v41, %v854_v34  ;;  %v470_v46 = vadd.f32 %v469_v40, %v307_v41  ;;  %v630_v47 = vpack.c.bf16 %v859_v43, %v856_v36 }
 0x104   :  { %632 = vst [vmem:[%s903_s3 + $0x8] sm:$0xff] %v610_v45   ;;  %636 = vst [vmem:[%s903_s3 + $0x28] sm:$0xff] %v630_v47  }
 0x105   :  { %v217_v48 = vpop.f32.mrb[8].mxu0  ;;  %v249_v49 = vpop.f32.mrb[8].mxu1 }
 0x106   :  { %v308_v50 = vadd.f32 %v574_v17, %v217_v48  ;;  %v678_v51 = vpop.f32.mrb[9].mxu0  ;;  %v870_v52 = vadd.f32 %v574_v17, %v249_v49  ;;  %v694_v54 = vpop.f32.mrb[9].mxu1 }
 0x107   :  { %v220_v55 = vpop.f32.mrb[10].mxu0  ;;  %v252_v56 = vpop.f32.mrb[10].mxu1 }
 0x108   :  { %v471_v57 = vadd.f32 %v470_v46, %v308_v50  ;;  %v309_v58 = vadd.f32 %v574_v17, %v220_v55  ;;  %v679_v59 = vpop.f32.mrb[11].mxu0  ;;  %v601_v60 = vpack.c.bf16 %v870_v52, %v870_v52  ;;  %v695_v61 = vpop.f32.mrb[11].mxu1  ;;  %v467_v15 = vmul.f32 %v588_v13, %v870_v52 }
 0x10a   :  { %v615_v62 = vpack.c.bf16 %v309_v58, %v308_v50  ;;  %v472_v63 = vadd.f32 %v471_v57, %v309_v58  ;;  %382 = vst [vmem:[%s903_s3 + $0x30] sm:$0xf] %v601_v60 }
 0x10c   :  { %633 = vst [vmem:[%s903_s3 + $0x10] sm:$0xff] %v615_v62  }
 0x10d   :  { %v225_v2 = vpop.f32.mrb[12].mxu0 }
 0x10e   :  { %v310_v3 = vadd.f32 %v574_v17, %v225_v2  ;;  %v682_v4 = vpop.f32.mrb[13].mxu0 }
 0x10f   :  { %v228_v6 = vpop.f32.mrb[14].mxu0 }
 0x110   :  { %v473_v7 = vadd.f32 %v472_v63, %v310_v3  ;;  %v311_v8 = vadd.f32 %v574_v17, %v228_v6  ;;  %v683_v9 = vpop.f32.mrb[15].mxu0 }
 0x112   :  { %v620_v10 = vpack.c.bf16 %v311_v8, %v310_v3  ;;  %v474_v11 = vadd.f32 %v473_v7, %v311_v8 }
 0x114   :  { %634 = vst [vmem:[%s903_s3 + $0x18] sm:$0xff] %v620_v10   ;;  %v475_v12 = vadd.f32 %v474_v11, %v834_v20 }
 0x116   :  { %v476_v14 = vadd.f32 %v475_v12, %v840_v27 }
 0x118   :  { %v477_v16 = vadd.f32 %v476_v14, %v856_v36 }
 0x11a   :  { %v478_v17 = vadd.f32 %v477_v16, %v859_v43 }
 0x11c   :  { %v479_v18 = vadd.f32 %v478_v17, %v467_v15 }
 0x11e   :  { %v480_v19 = vrot.slane %v479_v18, 4 }
 0x120   :  { %v481_v21 = vadd.f32 %v480_v19, %v479_v18 }
 0x122   :  { %v482_v22 = vrot.slane %v481_v21, 2 }
 0x124   :  { %v483_v23 = vadd.f32 %v482_v22, %v481_v21 }
 0x126   :  { %v484_v26 = vrot.slane %v483_v23, 1 }
 0x128   :  { %v485_v28 = vadd.f32 %v484_v26, %v483_v23 }
 0x12a   :  { %v488_v29 = vmul.f32 0.010204081, %v485_v28 }
 0x12c   :  { %v489_v30 = vsub.f32 %v836_v24, %v488_v29  ;;  %v490_v0 = vsub.f32 %v838_v25, %v488_v29  ;;  %v491_v31 = vsub.f32 %v854_v34, %v488_v29  ;;  %v492_v32 = vsub.f32 %v307_v41, %v488_v29 }
 0x12d   :  { %v493_v33 = vsub.f32 %v308_v50, %v488_v29  ;;  %v494_v35 = vsub.f32 %v309_v58, %v488_v29  ;;  %v495_v37 = vsub.f32 %v310_v3, %v488_v29  ;;  %v496_v38 = vsub.f32 %v311_v8, %v488_v29 }
 0x12e   :  { %v497_v39 = vsub.f32 %v834_v20, %v488_v29  ;;  %v498_v40 = vsub.f32 %v840_v27, %v488_v29  ;;  %v499_v42 = vsub.f32 %v856_v36, %v488_v29  ;;  %v500_v44 = vsub.f32 %v859_v43, %v488_v29 }
 0x12f   :  { %v501_v45 = vsub.f32 %v870_v52, %v488_v29  ;;  %v515_v24 = vmul.f32 %v489_v30, %v489_v30  ;;  %v516_v46 = vmul.f32 %v490_v0, %v490_v0  ;;  %v517_v25 = vmul.f32 %v491_v31, %v491_v31 }
 0x130   :  { %v518_v34 = vmul.f32 %v492_v32, %v492_v32  ;;  %v519_v48 = vmul.f32 %v493_v33, %v493_v33  ;;  %v520_v50 = vmul.f32 %v494_v35, %v494_v35  ;;  %v521_v53 = vmul.f32 %v495_v37, %v495_v37 }
 0x131   :  { %v528_v47 = vadd.f32 %v516_v46, %v515_v24  ;;  %v522_v54 = vmul.f32 %v496_v38, %v496_v38  ;;  %v523_v55 = vmul.f32 %v497_v39, %v497_v39  ;;  %v524_v56 = vmul.f32 %v498_v40, %v498_v40 }
 0x132   :  { %v514_v57 = vmul.f32 %v588_v13, %v501_v45  ;;  %v525_v52 = vmul.f32 %v499_v42, %v499_v42  ;;  %v526_v59 = vmul.f32 %v500_v44, %v500_v44 }
 0x133   :  { %v529_v41 = vadd.f32 %v528_v47, %v517_v25 }
 0x134   :  { %v527_v61 = vmul.f32 %v514_v57, %v514_v57 }
 0x135   :  { %v530_v49 = vadd.f32 %v529_v41, %v518_v34 }
 0x137   :  { %v531_v51 = vadd.f32 %v530_v49, %v519_v48 }
 0x139   :  { %v532_v20 = vadd.f32 %v531_v51, %v520_v50 }
 0x13b   :  { %v533_v27 = vadd.f32 %v532_v20, %v521_v53 }
 0x13d   :  { %v534_v36 = vadd.f32 %v533_v27, %v522_v54 }
 0x13f   :  { %v535_v43 = vadd.f32 %v534_v36, %v523_v55 }
 0x141   :  { %v536_v58 = vadd.f32 %v535_v43, %v524_v56 }
 0x143   :  { %v537_v60 = vadd.f32 %v536_v58, %v525_v52 }
 0x145   :  { %v538_v62 = vadd.f32 %v537_v60, %v526_v59 }
 0x147   :  { %v539_v63 = vadd.f32 %v538_v62, %v527_v61 }
 0x149   :  { %v540_v1 = vrot.slane %v539_v63, 4 }
 0x14b   :  { %v541_v2 = vadd.f32 %v540_v1, %v539_v63 }
 0x14d   :  { %v542_v3 = vrot.slane %v541_v2, 2 }
 0x14f   :  { %v543_v4 = vadd.f32 %v542_v3, %v541_v2 }
 0x151   :  { %v544_v5 = vrot.slane %v543_v4, 1 }
 0x153   :  { %v545_v6 = vadd.f32 %v544_v5, %v543_v4 }
 0x155   :  { %v547_v7 = vsel %vm546_vm2, %v485_v28, %v545_v6 }
 0x156   :  { %v549_v8 = vsel %vm548_vm3, %v547_v7, 0.0 }
 0x157   :  { %550 = vst [vmem:[%s904_s4] sm:$0xff] %v549_v8 }

</bundles_post_ra>
